<compile_context>
chip_gen: v5e
topology: v5e:2x2
jax: 0.10.0
libtpu: 0.0.40
codegen_flags: <defaults>
</compile_context>

<pallas_src>
import functools

import jax
import jax.numpy as jnp
from jax.experimental import pallas as pl
from jax.experimental.pallas import tpu as pltpu

LANE = 128        # lane-dense hidden dim inside the kernel
ROW_ALIGN = 8     # f32 sublane granularity for the batch tile


def _round_up(n, m):
    return (n + m - 1) // m * m


def toy_mlp_kernel(x_ref, w1_ref, b1_ref, w2_ref, b2_ref, o_ref):
    """Fused Linear -> ReLU -> Linear on one batch tile.

    x_ref : (TB, d_in)   f32  batch tile (streamed over the grid, narrow last dim)
    w1_ref: (d_in, 128)  f32  resident net1 weight (in, out); out dim zero-padded to 128
    b1_ref: (1, 128)     f32  resident net1 bias, zero-padded
    w2_ref: (128, d_out) f32  resident net2 weight (in, out); in dim zero-padded to 128
    b2_ref: (1, d_out)   f32  resident net2 bias
    o_ref : (TB, d_out)  f32  narrow output tile (masked partial stores; HBM-bound so cheap)
    """
    # First matmul on the MXU, f32 accumulation. Zero-padded w1 columns keep the
    # padded hidden lanes exactly zero.
    h = jnp.dot(x_ref[...], w1_ref[...], preferred_element_type=jnp.float32)
    # Bias + ReLU epilogue in f32 on the VPU (padded lanes stay 0: relu(0 + 0) = 0).
    h = jnp.maximum(h + b1_ref[...], 0.0)
    # Second matmul; zero-padded w2 rows line up with the zero hidden lanes -> exact.
    out = jnp.dot(h, w2_ref[...], preferred_element_type=jnp.float32)
    o_ref[...] = (out + b2_ref[...]).astype(o_ref.dtype)
    # TODO(synk): torch.distributed.all_reduce(output) is an identity on a single
    # replica; a multi-chip version needs pltpu.make_async_remote_copy + semaphores
    # (or a jax.lax.psum in the wrapper under shard_map).


@functools.partial(jax.jit, static_argnames=("block_rows",))
def toy_model_forward(x, w1, b1, w2, b2, *, block_rows=1024):
    """y = relu(x @ w1 + b1) @ w2 + b2.

    x : (B, 10) f32
    w1: (10, 10) f32 (= PyTorch net1.weight.T),  b1: (10,) f32
    w2: (10, 5)  f32 (= PyTorch net2.weight.T),  b2: (5,)  f32
    Returns (B, 5) f32.
    """
    B, d_in = x.shape
    d_hid = w1.shape[1]
    d_out = w2.shape[1]

    # Batch tile: multiple of the f32 sublane count, big enough to amortize the
    # per-grid-step overhead. Ragged last block is clamped/masked by Pallas, so x/out
    # never need row padding in HBM.
    tb = max(ROW_ALIGN, min(block_rows, _round_up(B, ROW_ALIGN)))
    tb = _round_up(tb, ROW_ALIGN)
    # v7x megacore: ensure >= 2 grid steps when the batch is big enough to split, so
    # the "parallel" batch axis uses both TensorCores (no-op on single-TC v5e/v6e).
    if pl.cdiv(B, tb) == 1 and B >= 32:
        tb = _round_up(pl.cdiv(B, 2), ROW_ALIGN)
    grid = (pl.cdiv(B, tb),)

    x = x.astype(jnp.float32)
    # Only the tiny weights/biases are zero-padded (exact); they are DMA'd once and
    # stay VMEM-resident via constant index_maps.
    w1_p = jnp.zeros((d_in, LANE), jnp.float32).at[:, :d_hid].set(w1.astype(jnp.float32))
    b1_p = jnp.zeros((1, LANE), jnp.float32).at[0, :d_hid].set(
        b1.reshape(-1).astype(jnp.float32))
    w2_p = jnp.zeros((LANE, d_out), jnp.float32).at[:d_hid, :].set(w2.astype(jnp.float32))
    b2_p = b2.reshape(1, d_out).astype(jnp.float32)

    return pl.pallas_call(
        toy_mlp_kernel,
        out_shape=jax.ShapeDtypeStruct((B, d_out), jnp.float32),
        grid_spec=pltpu.PrefetchScalarGridSpec(
            num_scalar_prefetch=0,
            grid=grid,
            in_specs=[
                pl.BlockSpec((tb, d_in), lambda i: (i, 0)),      # x: streamed, narrow
                pl.BlockSpec((d_in, LANE), lambda i: (0, 0)),    # w1: VMEM-resident
                pl.BlockSpec((1, LANE), lambda i: (0, 0)),       # b1: VMEM-resident
                pl.BlockSpec((LANE, d_out), lambda i: (0, 0)),   # w2: VMEM-resident
                pl.BlockSpec((1, d_out), lambda i: (0, 0)),      # b2: VMEM-resident
            ],
            out_specs=pl.BlockSpec((tb, d_out), lambda i: (i, 0)),
        ),
        compiler_params=pltpu.CompilerParams(
            # Independent batch tiles -> shard across both TensorCores on v7x.
            dimension_semantics=("parallel",),
            # Non-binding: resident weights + double-buffered narrow x/out tiles are
            # well under 1 MiB even at tb=2048; fits every generation's VMEM.
            vmem_limit_bytes=32 * 1024 * 1024,
        ),
    )(x, w1_p, b1_p, w2_p, b2_p)


if __name__ == "__main__":
    key = jax.random.PRNGKey(0)
    k_x, k_w1, k_b1, k_w2, k_b2 = jax.random.split(key, 5)

    B, D_IN, D_HID, D_OUT = 8, 10, 10, 5

    x = jax.random.normal(k_x, (B, D_IN), dtype=jnp.float32)
    # nn.Linear-shaped params; weights stored as (in, out) = PyTorch weight.T,
    # biases 1-D like PyTorch.
    w1 = jax.random.uniform(k_w1, (D_IN, D_HID), jnp.float32, -0.3, 0.3)
    b1 = jax.random.uniform(k_b1, (D_HID,), jnp.float32, -0.3, 0.3)
    w2 = jax.random.uniform(k_w2, (D_HID, D_OUT), jnp.float32, -0.3, 0.3)
    b2 = jax.random.uniform(k_b2, (D_OUT,), jnp.float32, -0.3, 0.3)

    out = toy_model_forward(x, w1, b1, w2, b2)
    jax.block_until_ready(out)

    # Reference check in plain f32 JAX — kernel is f32 end-to-end now, so tolerance
    # is tight (was 2e-2 with bf16 MXU inputs).
    ref = jnp.maximum(x @ w1 + b1[None, :], 0.0) @ w2 + b2[None, :]
    assert out.shape == (B, D_OUT)
    assert jnp.allclose(out, ref, atol=1e-3, rtol=1e-3), "mismatch vs reference"

    print("KERNEL_OK")
</pallas_src>

<mosaic_0001>
module attributes {stable_mosaic.version = 11 : i64} {
  func.func @toy_mlp_kernel(%arg0: i32, %arg1: memref<8x10xf32, #tpu.memory_space<vmem>>, %arg2: memref<10x128xf32, #tpu.memory_space<vmem>>, %arg3: memref<1x128xf32, #tpu.memory_space<vmem>>, %arg4: memref<128x5xf32, #tpu.memory_space<vmem>>, %arg5: memref<1x5xf32, #tpu.memory_space<vmem>>, %arg6: memref<8x5xf32, #tpu.memory_space<vmem>>) attributes {dimension_semantics = [#tpu.dimension_semantics<parallel>], iteration_bounds = array<i64: 1>, scalar_prefetch = 0 : i64, scratch_operands = 0 : i64, tpu.core_type = #tpu.core_type<tc>, window_params = [{transform_indices = @transform_0, window_bounds = array<i64: 8, 10>}, {pipeline_mode = #tpu.pipeline_mode<synchronous>, transform_indices = @transform_1, window_bounds = array<i64: 10, 128>}, {pipeline_mode = #tpu.pipeline_mode<synchronous>, transform_indices = @transform_2, window_bounds = array<i64: 1, 128>}, {pipeline_mode = #tpu.pipeline_mode<synchronous>, transform_indices = @transform_3, window_bounds = array<i64: 128, 5>}, {pipeline_mode = #tpu.pipeline_mode<synchronous>, transform_indices = @transform_4, window_bounds = array<i64: 1, 5>}, {transform_indices = @transform_5, window_bounds = array<i64: 8, 5>}]} {
    %c0 = arith.constant 0 : index
    %c0_0 = arith.constant 0 : index
    %0 = vector.load %arg1[%c0, %c0_0] : memref<8x10xf32, #tpu.memory_space<vmem>>, vector<8x10xf32>
    %c0_1 = arith.constant 0 : index
    %c0_2 = arith.constant 0 : index
    %1 = vector.load %arg2[%c0_1, %c0_2] : memref<10x128xf32, #tpu.memory_space<vmem>>, vector<10x128xf32>
    %cst = arith.constant dense<0.000000e+00> : vector<8x128xf32>
    %2 = tpu.matmul %0, %1, %cst {dimension_numbers = #tpu.dot_dimension_numbers<[1], [0], [0], [1], [0, 0, 1, 1], [], []>} : vector<8x10xf32>, vector<10x128xf32>, vector<8x128xf32> -> vector<8x128xf32>
    %c0_3 = arith.constant 0 : index
    %c0_4 = arith.constant 0 : index
    %3 = vector.load %arg3[%c0_3, %c0_4] : memref<1x128xf32, #tpu.memory_space<vmem>>, vector<1x128xf32>
    %4 = vector.broadcast %3 : vector<1x128xf32> to vector<8x128xf32>
    %5 = arith.addf %2, %4 : vector<8x128xf32>
    %cst_5 = arith.constant 0.000000e+00 : f32
    %6 = vector.broadcast %cst_5 : f32 to vector<8x128xf32>
    %7 = arith.maximumf %5, %6 : vector<8x128xf32>
    %c0_6 = arith.constant 0 : index
    %c0_7 = arith.constant 0 : index
    %8 = vector.load %arg4[%c0_6, %c0_7] : memref<128x5xf32, #tpu.memory_space<vmem>>, vector<128x5xf32>
    %cst_8 = arith.constant dense<0.000000e+00> : vector<8x5xf32>
    %9 = tpu.matmul %7, %8, %cst_8 {dimension_numbers = #tpu.dot_dimension_numbers<[1], [0], [0], [1], [0, 0, 1, 1], [], []>} : vector<8x128xf32>, vector<128x5xf32>, vector<8x5xf32> -> vector<8x5xf32>
    %c0_9 = arith.constant 0 : index
    %c0_10 = arith.constant 0 : index
    %10 = vector.load %arg5[%c0_9, %c0_10] : memref<1x5xf32, #tpu.memory_space<vmem>>, vector<1x5xf32>
    %11 = vector.broadcast %10 : vector<1x5xf32> to vector<8x5xf32>
    %12 = arith.addf %9, %11 : vector<8x5xf32>
    %c0_11 = arith.constant 0 : index
    %c0_12 = arith.constant 0 : index
    %13 = vector.load %arg6[%c0_11, %c0_12] : memref<8x5xf32, #tpu.memory_space<vmem>>, vector<8x5xf32>
    tpu.vector_store %arg6[%c0_11, %c0_12], %12 {strides = array<i32>} : memref<8x5xf32, #tpu.memory_space<vmem>>, vector<8x5xf32>,
    return
  }
  func.func @transform_0(%arg0: i32) -> (i32, i32) {
    %c0_i32 = arith.constant 0 : i32
    %c0_i32_0 = arith.constant 0 : i32
    return %arg0, %c0_i32 : i32, i32
  }
  func.func @transform_1(%arg0: i32) -> (i32, i32) {
    %c0_i32 = arith.constant 0 : i32
    %c0_i32_0 = arith.constant 0 : i32
    %c0_i32_1 = arith.constant 0 : i32
    return %c0_i32, %c0_i32_0 : i32, i32
  }
  func.func @transform_2(%arg0: i32) -> (i32, i32) {
    %c0_i32 = arith.constant 0 : i32
    %c0_i32_0 = arith.constant 0 : i32
    %c0_i32_1 = arith.constant 0 : i32
    return %c0_i32, %c0_i32_0 : i32, i32
  }
  func.func @transform_3(%arg0: i32) -> (i32, i32) {
    %c0_i32 = arith.constant 0 : i32
    %c0_i32_0 = arith.constant 0 : i32
    %c0_i32_1 = arith.constant 0 : i32
    return %c0_i32, %c0_i32_0 : i32, i32
  }
  func.func @transform_4(%arg0: i32) -> (i32, i32) {
    %c0_i32 = arith.constant 0 : i32
    %c0_i32_0 = arith.constant 0 : i32
    %c0_i32_1 = arith.constant 0 : i32
    return %c0_i32, %c0_i32_0 : i32, i32
  }
  func.func @transform_5(%arg0: i32) -> (i32, i32) {
    %c0_i32 = arith.constant 0 : i32
    %c0_i32_0 = arith.constant 0 : i32
    return %arg0, %c0_i32 : i32, i32
  }
}

</mosaic_0001>

<bundles_post_ra>
// kernel: toy_model_forward.1
= control target key start
LH: loop header
LB: loop body
LE: loop exit
PB: predicated region body
PF: predicated region fallthrough
CT: control target
= control target key end

     0   :  { %vm32_vm0 = vcmask 1041408   ;;  %vm28_vm1 = vcmask 80896   ;;  %s243_s0 = inlined_call_operand.vmem [shape: f32[8,10], index: 0, kind: input, shape index: {}]   ;;  %s244_s1 = inlined_call_operand.vmem [shape: f32[10,128], index: 1, kind: input, shape index: {}]   ;;  %s245_s2 = inlined_call_operand.vmem [shape: f32[1,128], index: 2, kind: input, shape index: {}]   ;;  %s246_s3 = inlined_call_operand.vmem [shape: f32[128,5], index: 3, kind: input, shape index: {}]   ;;  %s247_s4 = inlined_call_operand.vmem [shape: f32[1,5], index: 4, kind: input, shape index: {}]   ;;  %s248_s5 = inlined_call_operand.hbm [shape: f32[8,5], index: 5, kind: output, shape index: {}]  }
   0x1   :  { %v23_v0 = vld [vmem:[%s244_s1 + $0x8] sm:$0x3]  ;;  %v22_v1 = vld [vmem:[%s244_s1] sm:$0xff]  ;;  %v72_v3 = vld [vmem:[%s246_s3 + $0x78] sm:$0xff] }
   0x2   :  { %115 = vmatpush.msk.msra.mxu0 %vm32_vm0, %v23_v0  ;;  %v21_v2 = vld [vmem:[%s243_s0] sm:$0xff]  ;;  %v71_v4 = vld [vmem:[%s246_s3 + $0x70] sm:$0xff]  ;;  %77 = vmatpush.msra.mxu1 %v72_v3  ;;  %v70_v5 = vld [vmem:[%s246_s3 + $0x68] sm:$0xff] }
   0x3   :  { %v69_v6 = vld [vmem:[%s246_s3 + $0x60] sm:$0xff] }
   0x4   :  { %51 = vmatpush.msra.mxu0 %v22_v1  ;;  %78 = vmatpush.msra.mxu1 %v71_v4 }
   0x5   :  { %116 = vmatmul.msk.f32.vlgmr.msra.gmra.mxu0 %vm28_vm1, %v21_v2 }
   0x6   :  { %79 = vmatpush.msra.mxu1 %v70_v5 }
   0x7   :  { %10 = vsyncpa [#allocation3], 0  ;;  %v68_v7 = vld [vmem:[%s246_s3 + $0x58] sm:$0xff]  ;;  %v67_v8 = vld [vmem:[%s246_s3 + $0x50] sm:$0xff]  ;;  %s146_s6 = smov [#allocation2]   ;;  %s106_s10 = sshll.u32 %s248_s5, 4  ;;  %s107_s10 = int_to_ptr.hbm [resolvable:$true] %s106_s10 }
   0x8   :  { %80 = vmatpush.msra.mxu1 %v69_v6  ;;  %v66_v9 = vld [vmem:[%s246_s3 + $0x48] sm:$0xff]  ;;  %v65_v10 = vld [vmem:[%s246_s3 + $0x40] sm:$0xff]  ;;  %v64_v11 = vld [vmem:[%s246_s3 + $0x38] sm:$0xff]  ;;  %s104_s7 = sshll.u32 %s146_s6, 4  ;;  %vm97_vm2 = vcmask 39936   ;;  %s105_s7 = int_to_ptr.vmem [resolvable:$true] %s104_s7 }
   0x9   :  { %v63_v12 = vld [vmem:[%s246_s3 + $0x30] sm:$0xff]  ;;  %v62_v13 = vld [vmem:[%s246_s3 + $0x28] sm:$0xff]  ;;  %v61_v14 = vld [vmem:[%s246_s3 + $0x20] sm:$0xff] }
   0xa   :  { %81 = vmatpush.msra.mxu1 %v68_v7  ;;  %v60_v15 = vld [vmem:[%s246_s3 + $0x18] sm:$0xff]  ;;  %v59_v16 = vld [vmem:[%s246_s3 + $0x10] sm:$0xff]  ;;  %v58_v17 = vld [vmem:[%s246_s3 + $0x8] sm:$0xff] }
   0xb   :  { %v57_v18 = vld [vmem:[%s246_s3] sm:$0xff] }
   0xc   :  { %82 = vmatpush.msra.mxu1 %v67_v8  ;;  %v118_v19 = vld [vmem:[%s245_s2] ss:$0 sm:$0xff] }
   0xd   :  { %v119_v23 = vld [vmem:[%s247_s4] ss:$0 sm:$0xff] }
   0xe   :  { %83 = vmatpush.msra.mxu1 %v66_v9 }
  0x10   :  { %84 = vmatpush.msra.mxu1 %v65_v10 }
  0x12   :  { %85 = vmatpush.msra.mxu1 %v64_v11 }
  0x14   :  { %86 = vmatpush.msra.mxu1 %v63_v12 }
  0x16   :  { %87 = vmatpush.msra.mxu1 %v62_v13 }
  0x18   :  { %88 = vmatpush.msra.mxu1 %v61_v14 }
  0x1a   :  { %89 = vmatpush.msra.mxu1 %v60_v15 }
  0x1c   :  { %90 = vmatpush.msra.mxu1 %v59_v16 }
  0x1e   :  { %91 = vmatpush.msra.mxu1 %v58_v17 }
  0x20   :  { %92 = vmatpush.msra.mxu1 %v57_v18 }
  0x82   :  { %v53_v20 = vpop.f32.mrf.mxu0 }
  0x83   :  { %v54_v21 = vadd.f32 %v118_v19, %v53_v20 }
  0x85   :  { %v56_v22 = vmax.f32 %v54_v21, 0.0 }
  0x87   :  { %93 = vmatmul.f32.vlgmr.msra.gmra.mxu1 %v56_v22 }
 0x104   :  { %v94_v24 = vpop.f32.mrf.mxu1 }
 0x105   :  { %v95_v25 = vadd.f32 %v119_v23, %v94_v24 }
 0x107   :  { %98 = vst.msk [vmem:[#allocation2] sm:$0xff] %vm97_vm2, %v95_v25 }
 0x108   :  { %109 = dma.vmem_to_hbm [thread:$0]  %s105_s7, 128, %s107_s10, [#allocation3]  }
 0x109   :  { %144 = dma.done.wait [#allocation3], 128  }
 0x10a   :  { %145 = vsyncadd [#allocation3], 4294967168 }
 0x10b   :  { %114 = vsyncpa [#allocation3], 1 }

</bundles_post_ra>
